<compile_context>
chip_gen: v7x
topology: tpu7x:2x2x1
jax: 0.10.0
libtpu: 0.0.40
codegen_flags: <defaults>
</compile_context>

<pallas_src>
import math

import jax
import jax.numpy as jnp
import numpy as np
from jax.experimental import pallas as pl
from jax.experimental.pallas import tpu as pltpu


def _round_up(v, m):
    return ((v + m - 1) // m) * m


def _conv_gemm_kernel(x_ref, w_ref, b_ref, o_ref):
    """One (TM, TN) output tile: fused im2col GEMM + bias.

    x_ref: (TM, K)   im2col rows, K = KH*KW*Cin
    w_ref: (K, TN)   folded weights, TN = 128-padded slice of Cout
    b_ref: (1, TN)   bias slice
    o_ref: (TM, TN)  lane-dense output tile
    """
    acc = jnp.dot(x_ref[...], w_ref[...], preferred_element_type=jnp.float32)
    o_ref[...] = (acc + b_ref[...].astype(jnp.float32)).astype(o_ref.dtype)


def conv2d_static_same_padding(x, weight, bias, stride, *, block_m=128):
    """Forward pass of Conv2dStaticSamePadding (groups=1, dilation=1).

    x:      (N, Cin, H, W)      NCHW, like PyTorch
    weight: (Cout, Cin, KH, KW) OIHW
    bias:   (Cout,) or None
    stride: (sh, sw)
    returns (N, Cout, OH, OW) with OH = ceil(H/sh), OW = ceil(W/sw)
    """
    n, cin, h, w = x.shape
    cout, cin_w, kh, kw = weight.shape
    if cin_w != cin:
        # TODO(synk): grouped convolution (groups > 1) not implemented.
        raise NotImplementedError("groups != 1 is not supported")
    sh, sw = stride
    if block_m % 8 != 0:
        raise ValueError("block_m must be a multiple of 8")

    # ---- TF/Keras SAME padding, Python ints + floor division: matches the
    #      module exactly, including the negative (cropping) case via lax.pad.
    oh = math.ceil(h / sh)
    ow = math.ceil(w / sw)
    extra_h = (ow - 1) * sw - w + kw
    extra_v = (oh - 1) * sh - h + kh
    left = extra_h // 2
    right = extra_h - left
    top = extra_v // 2
    bottom = extra_v - top

    x_pad = jax.lax.pad(
        x, jnp.asarray(0, x.dtype),
        [(0, 0, 0), (0, 0, 0), (top, bottom, 0), (left, right, 0)])
    x_nhwc = jnp.transpose(x_pad, (0, 2, 3, 1))       # (N, Hp, Wp, Cin)

    # ---- im2col: fold the KH*KW taps into the channel axis (pure layout
    #      plumbing; every FLOP of the conv happens inside the Pallas kernel).
    pieces = []
    for i in range(kh):
        for j in range(kw):
            pieces.append(jax.lax.slice(
                x_nhwc,
                (0, i, j, 0),
                (n, i + (oh - 1) * sh + 1, j + (ow - 1) * sw + 1, cin),
                (1, sh, sw, 1)))                      # (N, OH, OW, Cin)
    patches = jnp.concatenate(pieces, axis=-1)        # (N, OH, OW, KH*KW*Cin)

    k = kh * kw * cin
    m = n * oh * ow
    lhs = patches.reshape(m, k)

    # ---- Tile sizes: rows tiled by block_m, Cout padded to 128 lanes so every
    #      output store is a full unmasked vreg.
    tm = min(block_m, _round_up(m, 8))
    m_pad = _round_up(m, tm)
    tn = 128
    cp = _round_up(cout, tn)

    lhs = jnp.pad(lhs, ((0, m_pad - m), (0, 0)))

    w2d = jnp.transpose(weight, (2, 3, 1, 0)).reshape(k, cout).astype(x.dtype)
    w2d = jnp.pad(w2d, ((0, 0), (0, cp - cout)))
    if bias is None:
        bias = jnp.zeros((cout,), x.dtype)
    b2d = jnp.pad(bias.astype(x.dtype).reshape(1, cout), ((0, 0), (0, cp - cout)))

    grid = (m_pad // tm, cp // tn)
    itemsize = jnp.dtype(x.dtype).itemsize
    flops = 2 * m_pad * k * cp
    bytes_accessed = (m_pad * k + grid[0] * (k * cp + cp) + m_pad * cp) * itemsize

    out2d = pl.pallas_call(
        _conv_gemm_kernel,
        out_shape=jax.ShapeDtypeStruct((m_pad, cp), x.dtype),
        grid_spec=pltpu.PrefetchScalarGridSpec(
            num_scalar_prefetch=0,
            grid=grid,
            in_specs=[
                pl.BlockSpec((tm, k), lambda i, j: (i, 0)),    # im2col rows
                pl.BlockSpec((k, tn), lambda i, j: (0, j)),    # weights (resident)
                pl.BlockSpec((1, tn), lambda i, j: (0, j)),    # bias (resident)
            ],
            out_specs=pl.BlockSpec((tm, tn), lambda i, j: (i, j)),
        ),
        compiler_params=pltpu.CompilerParams(
            dimension_semantics=("parallel", "parallel"),
            vmem_limit_bytes=32 * 1024 * 1024,  # blocks are tiny; safe on v5e/v6e/v7x
        ),
        cost_estimate=pl.CostEstimate(
            flops=flops, transcendentals=0, bytes_accessed=bytes_accessed),
    )(lhs, w2d, b2d)

    out = out2d[:m, :cout].reshape(n, oh, ow, cout)   # drop row / lane padding
    return jnp.transpose(out, (0, 3, 1, 2))           # back to NCHW


if __name__ == "__main__":
    # Module config: Conv2dStaticSamePadding(in_channels=4, out_channels=8,
    #                                        kernel_size=3, stride=2, bias=True)
    N, CIN, H, W = 2, 4, 16, 16
    COUT, K, STRIDE = 8, 3, 2

    key = jax.random.PRNGKey(0)
    kx, kw_, kb = jax.random.split(key, 3)

    x = jax.random.normal(kx, (N, CIN, H, W), jnp.float32)
    # Deterministic init mirroring nn.Conv2d's uniform(-1/sqrt(fan_in), 1/sqrt(fan_in)).
    fan_in = CIN * K * K
    bound = 1.0 / math.sqrt(fan_in)
    weight = jax.random.uniform(kw_, (COUT, CIN, K, K), jnp.float32, -bound, bound)
    bias = jax.random.uniform(kb, (COUT,), jnp.float32, -bound, bound)

    conv_fn = jax.jit(lambda a, b, c: conv2d_static_same_padding(
        a, b, c, (STRIDE, STRIDE), block_m=32))       # block_m=32 -> 4 grid steps
    out = conv_fn(x, weight, bias)
    out = jax.block_until_ready(out)

    # Sanity check vs XLA conv with TF-style SAME padding (same semantics here).
    ref = jax.lax.conv_general_dilated(
        x, weight, window_strides=(STRIDE, STRIDE), padding="SAME",
        dimension_numbers=("NCHW", "OIHW", "NCHW"))
    ref = ref + bias[None, :, None, None]

    assert out.shape == (N, COUT, math.ceil(H / STRIDE), math.ceil(W / STRIDE)), out.shape
    np.testing.assert_allclose(np.asarray(out), np.asarray(ref), atol=1e-4, rtol=1e-4)

    print("KERNEL_OK")
</pallas_src>

<mosaic_0001>
module attributes {stable_mosaic.version = 11 : i64} {
  func.func @_conv_gemm_kernel(%arg0: i32, %arg1: i32, %arg2: memref<32x36xf32, #tpu.memory_space<vmem>>, %arg3: memref<36x128xf32, #tpu.memory_space<vmem>>, %arg4: memref<1x128xf32, #tpu.memory_space<vmem>>, %arg5: memref<32x128xf32, #tpu.memory_space<vmem>>) attributes {dimension_semantics = [#tpu.dimension_semantics<parallel>, #tpu.dimension_semantics<parallel>], iteration_bounds = array<i64: 4, 1>, scalar_prefetch = 0 : i64, scratch_operands = 0 : i64, tpu.core_type = #tpu.core_type<tc>, window_params = [{transform_indices = @transform_0, window_bounds = array<i64: 32, 36>}, {transform_indices = @transform_1, window_bounds = array<i64: 36, 128>}, {transform_indices = @transform_2, window_bounds = array<i64: 1, 128>}, {transform_indices = @transform_3, window_bounds = array<i64: 32, 128>}]} {
    %c0 = arith.constant 0 : index
    %c0_0 = arith.constant 0 : index
    %0 = vector.load %arg2[%c0, %c0_0] : memref<32x36xf32, #tpu.memory_space<vmem>>, vector<32x36xf32>
    %c0_1 = arith.constant 0 : index
    %c0_2 = arith.constant 0 : index
    %1 = vector.load %arg3[%c0_1, %c0_2] : memref<36x128xf32, #tpu.memory_space<vmem>>, vector<36x128xf32>
    %cst = arith.constant dense<0.000000e+00> : vector<32x128xf32>
    %2 = tpu.matmul %0, %1, %cst {dimension_numbers = #tpu.dot_dimension_numbers<[1], [0], [0], [1], [0, 0, 1, 1], [], []>} : vector<32x36xf32>, vector<36x128xf32>, vector<32x128xf32> -> vector<32x128xf32>
    %c0_3 = arith.constant 0 : index
    %c0_4 = arith.constant 0 : index
    %3 = vector.load %arg4[%c0_3, %c0_4] : memref<1x128xf32, #tpu.memory_space<vmem>>, vector<1x128xf32>
    %4 = vector.broadcast %3 : vector<1x128xf32> to vector<32x128xf32>
    %5 = arith.addf %2, %4 : vector<32x128xf32>
    %c0_5 = arith.constant 0 : index
    %c0_6 = arith.constant 0 : index
    %6 = vector.load %arg5[%c0_5, %c0_6] : memref<32x128xf32, #tpu.memory_space<vmem>>, vector<32x128xf32>
    tpu.vector_store %arg5[%c0_5, %c0_6], %5 {strides = array<i32>} : memref<32x128xf32, #tpu.memory_space<vmem>>, vector<32x128xf32>,
    return
  }
  func.func @transform_0(%arg0: i32, %arg1: i32) -> (i32, i32) {
    %c0_i32 = arith.constant 0 : i32
    %c0_i32_0 = arith.constant 0 : i32
    return %arg0, %c0_i32 : i32, i32
  }
  func.func @transform_1(%arg0: i32, %arg1: i32) -> (i32, i32) {
    %c0_i32 = arith.constant 0 : i32
    %c0_i32_0 = arith.constant 0 : i32
    return %c0_i32, %arg1 : i32, i32
  }
  func.func @transform_2(%arg0: i32, %arg1: i32) -> (i32, i32) {
    %c0_i32 = arith.constant 0 : i32
    %c0_i32_0 = arith.constant 0 : i32
    return %c0_i32, %arg1 : i32, i32
  }
  func.func @transform_3(%arg0: i32, %arg1: i32) -> (i32, i32) {
    %c0_i32 = arith.constant 0 : i32
    return %arg0, %arg1 : i32, i32
  }
}

</mosaic_0001>

<bundles_post_ra>
// kernel: _lambda_.1
= control target key start
LH: loop header
LB: loop body
LE: loop exit
PB: predicated region body
PF: predicated region fallthrough
CT: control target
= control target key end

     0   :  { %s575_s12 = smov 0   ;;  %s577_s13 = smov 0   ;;  %s626_s0 = inlined_call_operand.vmem [shape: f32[128,36], index: 0, kind: input, shape index: {}]   ;;  %s627_s1 = inlined_call_operand.vmem [shape: f32[36,128], index: 1, kind: input, shape index: {}]   ;;  %s628_s2 = inlined_call_operand.vmem [shape: f32[1,128], index: 2, kind: input, shape index: {}]   ;;  %s629_s3 = inlined_call_operand.vmem [shape: f32[128,128], index: 3, kind: output, shape index: {}]  }
   0x1   :  { %s579_s14 = smov 0  }
   0x2 LB: > { %s25_s15 = sadd.s32 1, %s549_s13  ;;  %p455_p0 = scmp.ge.s32.totalorder %s553_s14, 1  ;;  %s553_s14 = sphi %s579_s14, %s13_s14   ;;  %s549_s13 = sphi %s577_s13, %s631_s13   ;;  %s545_s12 = sphi %s575_s12, %s630_s12  }
   0x3   : > { %p27_p1 = scmp.ge.s32.totalorder %s25_s15, 4  ;;  %p169_p2 = scmp.lt.s32.totalorder %s553_s14, 5 }
   0x5   : > { %s633_s15 = smov (%p27_p1, %s25_s15), 0  ;;  %p170_p3 = pnand %p455_p0, %p169_p2 }
   0x6   : > { %v229_v0 = vld [vmem:[%s627_s1] sm:$0xff] (!%p170_p3)  ;;  %v230_v1 = vld [vmem:[%s627_s1 + $0x8] sm:$0xff] (!%p170_p3)  ;;  %v231_v2 = vld [vmem:[%s627_s1 + $0x10] sm:$0xff] (!%p170_p3)  ;;  %s456_s22 = sshll.u32 (!%p170_p3), %s545_s12, 2  ;;  %vm254_vm0 = vcmask (!%p170_p3), 1043456   ;;  %vm241_vm1 = vcmask (!%p170_p3), 293888  }
   0x7   : > { %173 = sbr.rel (%p170_p3) target bundleno = 236 (0xec), region = 32  ;;  %v493_v3 = vpack.c.bf16 (!%p170_p3), %v230_v1, %v229_v0  ;;  %v232_v4 = vld [vmem:[%s627_s1 + $0x18] sm:$0xff] (!%p170_p3)  ;;  %p204_p4 = scmp.lt.s32.totalorder (!%p170_p3), %s456_s22, 15  ;;  %v233_v6 = vld [vmem:[%s627_s1 + $0x20] sm:$0xf] (!%p170_p3) }
   0x8   : > { %v497_v5 = vpack.c.bf16 (!%p170_p3), %v232_v4, %v231_v2  ;;  %v460_v11 = vld [vmem:[%s628_s2] ss:$0 sm:$0xff] (!%p170_p3) }
   0x9   : > { %494 = vmatprep.subr.bf16.mxu0 (!%p170_p3), %v493_v3  ;;  %501 = vmatprep.subr.bf16.mxu1 (!%p170_p3), %v493_v3 }
   0xa   : > { %496 = vmatpush3.bf16.msra.mxu0 (!%p170_p3), %v493_v3  ;;  %504 = vmatpush3.bf16.msra.mxu1 (!%p170_p3), %v493_v3 }
   0xb   : > { %498 = vmatprep.subr.bf16.mxu0 (!%p170_p3), %v497_v5  ;;  %502 = vmatprep.subr.bf16.mxu1 (!%p170_p3), %v497_v5 }
   0xe   : > { %s635_s22 = smov (!%p204_p4, %s456_s22), 15  ;;  %500 = vmatpush3.bf16.msra.mxu0 %v497_v5  ;;  %505 = vmatpush3.bf16.msra.mxu1 %v497_v5 }
   0xf   : > { %s457_s25 = sshll.u32 %s635_s22, 3  ;;  %485 = vmatprep.subr.msk.mxu0 %vm254_vm0, %v233_v6  ;;  %503 = vmatprep.subr.msk.mxu1 %vm254_vm0, %v233_v6 }
  0x10   : > { %s207_s30 = scalar_lea.vmem %s626_s0, %s457_s25  ;;  %s223_s8 = scalar_lea.vmem %s629_s3, %s457_s25 }
  0x11   : > { %v225_v7 = vld [vmem:[%s207_s30] sm:$0xff]  ;;  %v227_v8 = vld [vmem:[%s207_s30 + $0x10] sm:$0xff]  ;;  %v226_v9 = vld [vmem:[%s207_s30 + $0x8] sm:$0xff] }
  0x12   : > { %487 = vmatprep.mubr.msk.f32.mxu0 %vm241_vm1, %v225_v7  ;;  %490 = vmatprep.mubr.msk.f32.mxu1 %vm241_vm1, %v227_v8  ;;  %v228_v10 = vld [vmem:[%s207_s30 + $0x18] sm:$0xff] }
  0x13   : > { %486 = vmatpush3.msk.msra.mxu0 %vm254_vm0, %v233_v6  ;;  %506 = vmatpush3.msk.msra.mxu1 %vm254_vm0, %v233_v6 }
  0x14   : > { %488 = vmatmul.mubr.msk.f32.vlgmr.msra.gmra.mrb[0].mxu0 %vm241_vm1, %v226_v9  ;;  %491 = vmatmul.mubr.msk.f32.vlgmr.msra.gmra.mrb[0].mxu1 %vm241_vm1, %v228_v10 }
  0xe7   : > { %v489_v12 = vpop.f32.mrb[0].mxu0  ;;  %v492_v13 = vpop.f32.mrb[0].mxu1 }
  0xe8   : > { %v330_v14 = vadd.f32 %v489_v12, %v460_v11  ;;  %v340_v15 = vadd.f32 %v492_v13, %v460_v11  ;;  %v324_v16 = vpop.f32.mrb[1].mxu0  ;;  %v334_v17 = vpop.f32.mrb[1].mxu1 }
  0xe9   : > { %v325_v18 = vadd.f32 %v460_v11, %v324_v16  ;;  %v335_v19 = vadd.f32 %v460_v11, %v334_v17 }
  0xea   : > { %344 = vst [vmem:[%s223_s8 + $0x8] sm:$0xff] %v330_v14  ;;  %346 = vst [vmem:[%s223_s8 + $0x18] sm:$0xff] %v340_v15 }
  0xeb   : > { %343 = vst [vmem:[%s223_s8] sm:$0xff] %v325_v18  ;;  %345 = vst [vmem:[%s223_s8 + $0x10] sm:$0xff] %v335_v19 }
  0xec PF: > { %s13_s14 = sadd.s32 1, %s553_s14   ;;  %s630_s12 = smov %s549_s13 }
  0xed   : > { %p10_p5 = scmp.ge.s32.totalorder %s13_s14, 6   ;;  %s631_s13 = smov %s633_s15 }
  0xef   :  { %12 = sbr.rel (!%p10_p5) target bundleno = 2 (0x2), region = 68 }

</bundles_post_ra>
